<compile_context>
chip_gen: v5e
topology: v5e:2x2
jax: 0.10.0
libtpu: 0.0.40
codegen_flags: <defaults>
</compile_context>

<pallas_src>
import jax
import jax.numpy as jnp
from jax.experimental import pallas as pl
from jax.experimental.pallas import tpu as pltpu

BOOST_ACCEL = 0.18
FRAME_TIME = 0.1
GRAVITY_ACCEL = 0.12

_BT = BOOST_ACCEL * FRAME_TIME      # boost * dt
_GT = GRAVITY_ACCEL * FRAME_TIME    # gravity * dt


def _round_up(x, m):
    return ((x + m - 1) // m) * m


def dynamics_kernel(state_ref, action_ref, out_ref):
    # state_ref:  (5, R, 128)  features = [y, ydot, x, xdot, theta]
    # action_ref: (2, R, 128)  features = [thrust, omega]
    # out_ref:    (5, R, 128)
    y = state_ref[0, :, :]
    ydot = state_ref[1, :, :]
    x = state_ref[2, :, :]
    xdot = state_ref[3, :, :]
    theta = state_ref[4, :, :]

    thrust = action_ref[0, :, :]
    omega = action_ref[1, :, :]

    cos_t = jnp.cos(theta)          # EUP
    sin_t = jnp.sin(theta)          # EUP

    # pre-step state update (thrust, gravity, omega), using the *old* theta
    ydot_new = ydot + _BT * (cos_t * thrust) - _GT
    xdot_new = xdot - _BT * (sin_t * thrust)
    theta_new = theta - FRAME_TIME * omega

    # step matrix applied explicitly: y += dt*ydot_new, x += dt*xdot_new
    out_ref[0, :, :] = y + FRAME_TIME * ydot_new
    out_ref[1, :, :] = ydot_new
    out_ref[2, :, :] = x + FRAME_TIME * xdot_new
    out_ref[3, :, :] = xdot_new
    out_ref[4, :, :] = theta_new


def dynamics_forward_fmajor(state_fm, action_fm, *, tile_rows=1024):
    """Feature-major hot path.

    state_fm: (5, N) f32, action_fm: (2, N) f32 -> (5, N) f32.
    """
    state_fm = jnp.asarray(state_fm, jnp.float32)
    action_fm = jnp.asarray(action_fm, jnp.float32)
    n = state_fm.shape[1]

    # Pad batch to a multiple of 128 lanes (no-op when already aligned).
    padded = _round_up(max(n, 128), 128)
    if padded != n:
        state_fm = jnp.pad(state_fm, ((0, 0), (0, padded - n)))
        action_fm = jnp.pad(action_fm, ((0, 0), (0, padded - n)))

    total_rows = padded // 128
    # Free contiguous reshape to the (8,128)-dense 3-D layout.
    state_3d = state_fm.reshape(5, total_rows, 128)
    action_3d = action_fm.reshape(2, total_rows, 128)

    # Tile selection: big tiles for HBM-bound streaming, but keep >=2 blocks
    # when there is enough work so the "parallel" axis feeds both v7x TCs.
    if total_rows <= tile_rows:
        if total_rows >= 16:
            tile_rows = _round_up(pl.cdiv(total_rows, 2), 8)
        else:
            tile_rows = total_rows            # equals full dim -> always legal
    else:
        tile_rows = max(8, _round_up(tile_rows, 8))
    grid = (pl.cdiv(total_rows, tile_rows),)

    # 12 f32 rows (5 in + 2 in + 5 out) per lane-column, double buffered.
    block_bytes = 12 * tile_rows * 128 * 4
    vmem_limit = min(max(2 * block_bytes + (2 << 20), 16 << 20), 64 << 20)

    out_3d = pl.pallas_call(
        dynamics_kernel,
        out_shape=jax.ShapeDtypeStruct((5, total_rows, 128), jnp.float32),
        grid=grid,
        in_specs=[
            pl.BlockSpec((5, tile_rows, 128), lambda i: (0, i, 0)),
            pl.BlockSpec((2, tile_rows, 128), lambda i: (0, i, 0)),
        ],
        out_specs=pl.BlockSpec((5, tile_rows, 128), lambda i: (0, i, 0)),
        compiler_params=pltpu.CompilerParams(
            dimension_semantics=("parallel",),
            vmem_limit_bytes=vmem_limit),
    )(state_3d, action_3d)

    return out_3d.reshape(5, padded)[:, :n]


def dynamics_forward(state, action, *, tile_rows=1024):
    """PyTorch-layout compatibility wrapper.

    state: (N,5) f32, action: (N,2) f32 -> (N,5) f32 (matches the nn.Module).
    Prefer dynamics_forward_fmajor for repeated steps: these transposes are
    extra HBM passes around an otherwise single-pass memory-bound kernel.
    """
    state = jnp.asarray(state, jnp.float32)
    action = jnp.asarray(action, jnp.float32)
    out_fm = dynamics_forward_fmajor(state.T, action.T, tile_rows=tile_rows)
    return out_fm.T


def dynamics_reference(state, action):
    """Pure-JAX reference mirroring the PyTorch forward exactly."""
    state = jnp.asarray(state, jnp.float32)
    action = jnp.asarray(action, jnp.float32)
    delta_state_gravity = jnp.array(
        [0.0, -GRAVITY_ACCEL * FRAME_TIME, 0.0, 0.0, 0.0], dtype=jnp.float32)
    n = state.shape[0]
    state_tensor = jnp.zeros((n, 5), dtype=jnp.float32)
    state_tensor = state_tensor.at[:, 1].set(jnp.cos(state[:, 4]))
    state_tensor = state_tensor.at[:, 3].set(-jnp.sin(state[:, 4]))
    delta_state = BOOST_ACCEL * FRAME_TIME * state_tensor * action[:, 0:1]
    delta_state_theta = FRAME_TIME * jnp.array(
        [0.0, 0.0, 0.0, 0.0, -1.0], dtype=jnp.float32) * action[:, 1:2]
    state = state + delta_state + delta_state_gravity + delta_state_theta
    step_mat = jnp.array(
        [[1.0, FRAME_TIME, 0.0, 0.0, 0.0],
         [0.0, 1.0, 0.0, 0.0, 0.0],
         [0.0, 0.0, 1.0, FRAME_TIME, 0.0],
         [0.0, 0.0, 0.0, 1.0, 0.0],
         [0.0, 0.0, 0.0, 0.0, 1.0]], dtype=jnp.float32)
    return (step_mat @ state.T).T


if __name__ == "__main__":
    key = jax.random.PRNGKey(0)

    # Small primary test (matches the module's typical tiny batch).
    k1, k2, k3, k4 = jax.random.split(key, 4)
    N = 8
    state = jax.random.normal(k1, (N, 5), dtype=jnp.float32)
    action = jax.random.normal(k2, (N, 2), dtype=jnp.float32)
    out = jax.block_until_ready(dynamics_forward(state, action))
    ref = dynamics_reference(state, action)
    assert out.shape == (N, 5)
    assert jnp.allclose(out, ref, atol=1e-5, rtol=1e-5)

    # Secondary test exercising padding, a multi-block grid and a ragged
    # final block (still tiny): N=3000 -> 24 sublane-rows, 2 grid blocks.
    N2 = 3000
    state2 = jax.random.normal(k3, (N2, 5), dtype=jnp.float32)
    action2 = jax.random.normal(k4, (N2, 2), dtype=jnp.float32)
    out2 = jax.block_until_ready(
        dynamics_forward(state2, action2, tile_rows=16))
    ref2 = dynamics_reference(state2, action2)
    assert out2.shape == (N2, 5)
    assert jnp.allclose(out2, ref2, atol=1e-5, rtol=1e-5)

    print("KERNEL_OK")
</pallas_src>

<mosaic_0001>
module attributes {stable_mosaic.version = 11 : i64} {
  func.func @dynamics_kernel(%arg0: i32, %arg1: memref<5x1x128xf32, #tpu.memory_space<vmem>>, %arg2: memref<2x1x128xf32, #tpu.memory_space<vmem>>, %arg3: memref<5x1x128xf32, #tpu.memory_space<vmem>>) attributes {dimension_semantics = [#tpu.dimension_semantics<parallel>], iteration_bounds = array<i64: 1>, scalar_prefetch = 0 : i64, scratch_operands = 0 : i64, tpu.core_type = #tpu.core_type<tc>, window_params = [{transform_indices = @transform_0, window_bounds = array<i64: 5, 1, 128>}, {transform_indices = @transform_1, window_bounds = array<i64: 2, 1, 128>}, {transform_indices = @transform_2, window_bounds = array<i64: 5, 1, 128>}]} {
    %c0 = arith.constant 0 : index
    %c0_0 = arith.constant 0 : index
    %c0_1 = arith.constant 0 : index
    %0 = vector.load %arg1[%c0, %c0_0, %c0_1] : memref<5x1x128xf32, #tpu.memory_space<vmem>>, vector<1x1x128xf32>
    %1 = vector.shape_cast %0 : vector<1x1x128xf32> to vector<1x128xf32>
    %c1 = arith.constant 1 : index
    %c0_2 = arith.constant 0 : index
    %c0_3 = arith.constant 0 : index
    %2 = vector.load %arg1[%c1, %c0_2, %c0_3] : memref<5x1x128xf32, #tpu.memory_space<vmem>>, vector<1x1x128xf32>
    %3 = vector.shape_cast %2 : vector<1x1x128xf32> to vector<1x128xf32>
    %c2 = arith.constant 2 : index
    %c0_4 = arith.constant 0 : index
    %c0_5 = arith.constant 0 : index
    %4 = vector.load %arg1[%c2, %c0_4, %c0_5] : memref<5x1x128xf32, #tpu.memory_space<vmem>>, vector<1x1x128xf32>
    %5 = vector.shape_cast %4 : vector<1x1x128xf32> to vector<1x128xf32>
    %c3 = arith.constant 3 : index
    %c0_6 = arith.constant 0 : index
    %c0_7 = arith.constant 0 : index
    %6 = vector.load %arg1[%c3, %c0_6, %c0_7] : memref<5x1x128xf32, #tpu.memory_space<vmem>>, vector<1x1x128xf32>
    %7 = vector.shape_cast %6 : vector<1x1x128xf32> to vector<1x128xf32>
    %c4 = arith.constant 4 : index
    %c0_8 = arith.constant 0 : index
    %c0_9 = arith.constant 0 : index
    %8 = vector.load %arg1[%c4, %c0_8, %c0_9] : memref<5x1x128xf32, #tpu.memory_space<vmem>>, vector<1x1x128xf32>
    %9 = vector.shape_cast %8 : vector<1x1x128xf32> to vector<1x128xf32>
    %c0_10 = arith.constant 0 : index
    %c0_11 = arith.constant 0 : index
    %c0_12 = arith.constant 0 : index
    %10 = vector.load %arg2[%c0_10, %c0_11, %c0_12] : memref<2x1x128xf32, #tpu.memory_space<vmem>>, vector<1x1x128xf32>
    %11 = vector.shape_cast %10 : vector<1x1x128xf32> to vector<1x128xf32>
    %c1_13 = arith.constant 1 : index
    %c0_14 = arith.constant 0 : index
    %c0_15 = arith.constant 0 : index
    %12 = vector.load %arg2[%c1_13, %c0_14, %c0_15] : memref<2x1x128xf32, #tpu.memory_space<vmem>>, vector<1x1x128xf32>
    %13 = vector.shape_cast %12 : vector<1x1x128xf32> to vector<1x128xf32>
    %14 = math.cos %9 : vector<1x128xf32>
    %15 = math.sin %9 : vector<1x128xf32>
    %16 = arith.mulf %14, %11 : vector<1x128xf32>
    %cst = arith.constant 1.800000e-02 : f32
    %17 = vector.broadcast %cst : f32 to vector<1x128xf32>
    %18 = arith.mulf %17, %16 : vector<1x128xf32>
    %19 = arith.addf %3, %18 : vector<1x128xf32>
    %cst_16 = arith.constant 1.200000e-02 : f32
    %20 = vector.broadcast %cst_16 : f32 to vector<1x128xf32>
    %21 = arith.subf %19, %20 : vector<1x128xf32>
    %22 = arith.mulf %15, %11 : vector<1x128xf32>
    %cst_17 = arith.constant 1.800000e-02 : f32
    %23 = vector.broadcast %cst_17 : f32 to vector<1x128xf32>
    %24 = arith.mulf %23, %22 : vector<1x128xf32>
    %25 = arith.subf %7, %24 : vector<1x128xf32>
    %cst_18 = arith.constant 1.000000e-01 : f32
    %26 = vector.broadcast %cst_18 : f32 to vector<1x128xf32>
    %27 = arith.mulf %26, %13 : vector<1x128xf32>
    %28 = arith.subf %9, %27 : vector<1x128xf32>
    %cst_19 = arith.constant 1.000000e-01 : f32
    %29 = vector.broadcast %cst_19 : f32 to vector<1x128xf32>
    %30 = arith.mulf %29, %21 : vector<1x128xf32>
    %31 = arith.addf %1, %30 : vector<1x128xf32>
    %c0_20 = arith.constant 0 : index
    %c0_21 = arith.constant 0 : index
    %c0_22 = arith.constant 0 : index
    %32 = vector.load %arg3[%c0_20, %c0_21, %c0_22] : memref<5x1x128xf32, #tpu.memory_space<vmem>>, vector<1x1x128xf32>
    %33 = vector.shape_cast %32 : vector<1x1x128xf32> to vector<1x128xf32>
    %34 = vector.shape_cast %31 : vector<1x128xf32> to vector<1x1x128xf32>
    tpu.vector_store %arg3[%c0_20, %c0_21, %c0_22], %34 {strides = array<i32>} : memref<5x1x128xf32, #tpu.memory_space<vmem>>, vector<1x1x128xf32>,
    %c1_23 = arith.constant 1 : index
    %c0_24 = arith.constant 0 : index
    %c0_25 = arith.constant 0 : index
    %35 = vector.load %arg3[%c1_23, %c0_24, %c0_25] : memref<5x1x128xf32, #tpu.memory_space<vmem>>, vector<1x1x128xf32>
    %36 = vector.shape_cast %35 : vector<1x1x128xf32> to vector<1x128xf32>
    %37 = vector.shape_cast %21 : vector<1x128xf32> to vector<1x1x128xf32>
    tpu.vector_store %arg3[%c1_23, %c0_24, %c0_25], %37 {strides = array<i32>} : memref<5x1x128xf32, #tpu.memory_space<vmem>>, vector<1x1x128xf32>,
    %cst_26 = arith.constant 1.000000e-01 : f32
    %38 = vector.broadcast %cst_26 : f32 to vector<1x128xf32>
    %39 = arith.mulf %38, %25 : vector<1x128xf32>
    %40 = arith.addf %5, %39 : vector<1x128xf32>
    %c2_27 = arith.constant 2 : index
    %c0_28 = arith.constant 0 : index
    %c0_29 = arith.constant 0 : index
    %41 = vector.load %arg3[%c2_27, %c0_28, %c0_29] : memref<5x1x128xf32, #tpu.memory_space<vmem>>, vector<1x1x128xf32>
    %42 = vector.shape_cast %41 : vector<1x1x128xf32> to vector<1x128xf32>
    %43 = vector.shape_cast %40 : vector<1x128xf32> to vector<1x1x128xf32>
    tpu.vector_store %arg3[%c2_27, %c0_28, %c0_29], %43 {strides = array<i32>} : memref<5x1x128xf32, #tpu.memory_space<vmem>>, vector<1x1x128xf32>,
    %c3_30 = arith.constant 3 : index
    %c0_31 = arith.constant 0 : index
    %c0_32 = arith.constant 0 : index
    %44 = vector.load %arg3[%c3_30, %c0_31, %c0_32] : memref<5x1x128xf32, #tpu.memory_space<vmem>>, vector<1x1x128xf32>
    %45 = vector.shape_cast %44 : vector<1x1x128xf32> to vector<1x128xf32>
    %46 = vector.shape_cast %25 : vector<1x128xf32> to vector<1x1x128xf32>
    tpu.vector_store %arg3[%c3_30, %c0_31, %c0_32], %46 {strides = array<i32>} : memref<5x1x128xf32, #tpu.memory_space<vmem>>, vector<1x1x128xf32>,
    %c4_33 = arith.constant 4 : index
    %c0_34 = arith.constant 0 : index
    %c0_35 = arith.constant 0 : index
    %47 = vector.load %arg3[%c4_33, %c0_34, %c0_35] : memref<5x1x128xf32, #tpu.memory_space<vmem>>, vector<1x1x128xf32>
    %48 = vector.shape_cast %47 : vector<1x1x128xf32> to vector<1x128xf32>
    %49 = vector.shape_cast %28 : vector<1x128xf32> to vector<1x1x128xf32>
    tpu.vector_store %arg3[%c4_33, %c0_34, %c0_35], %49 {strides = array<i32>} : memref<5x1x128xf32, #tpu.memory_space<vmem>>, vector<1x1x128xf32>,
    return
  }
  func.func @transform_0(%arg0: i32) -> (i32, i32, i32) {
    %c0_i32 = arith.constant 0 : i32
    %c0_i32_0 = arith.constant 0 : i32
    %c0_i32_1 = arith.constant 0 : i32
    return %c0_i32, %arg0, %c0_i32_0 : i32, i32, i32
  }
  func.func @transform_1(%arg0: i32) -> (i32, i32, i32) {
    %c0_i32 = arith.constant 0 : i32
    %c0_i32_0 = arith.constant 0 : i32
    %c0_i32_1 = arith.constant 0 : i32
    return %c0_i32, %arg0, %c0_i32_0 : i32, i32, i32
  }
  func.func @transform_2(%arg0: i32) -> (i32, i32, i32) {
    %c0_i32 = arith.constant 0 : i32
    %c0_i32_0 = arith.constant 0 : i32
    %c0_i32_1 = arith.constant 0 : i32
    return %c0_i32, %arg0, %c0_i32_0 : i32, i32, i32
  }
}

</mosaic_0001>

<bundles_post_ra>
// kernel: tpu_custom_call.1
= control target key start
LH: loop header
LB: loop body
LE: loop exit
PB: predicated region body
PF: predicated region fallthrough
CT: control target
= control target key end

     0   :  { %7 = vsyncpa [#allocation3], 0  ;;  %s596_s0 = inlined_call_operand.hbm [shape: f32[5,1,128], index: 0, kind: input, shape index: {}]   ;;  %s597_s1 = inlined_call_operand.hbm [shape: f32[2,1,128], index: 1, kind: input, shape index: {}]   ;;  %s598_s2 = inlined_call_operand.hbm [shape: f32[5,1,128], index: 2, kind: output, shape index: {}]  }
   0x1   :  { %8 = vsyncpa [#allocation6], 0 }
   0x2   :  { %9 = vsyncpa [#allocation4], 0  ;;  %s14_s11 = sshll.u32 %s596_s0, 4  ;;  %s504_s12 = smov [#allocation2]   ;;  %s15_s11 = int_to_ptr.hbm [resolvable:$true] %s14_s11 }
   0x3   :  { %s16_s13 = sshll.u32 %s504_s12, 4  ;;  %s27_s16 = sshll.u32 %s597_s1, 4  ;;  %s17_s13 = int_to_ptr.vmem [resolvable:$true] %s16_s13  ;;  %s28_s16 = int_to_ptr.hbm [resolvable:$true] %s27_s16 }
   0x4   :  { %s505_s17 = smov 16   ;;  %s506_s18 = smov 1  }
   0x5   :  { %22 = dma.hbm_to_vmem [thread:$0]  %s15_s11, 80, %s17_s13, [#allocation3], %s505_s17, %s505_s17, %s506_s18  }
   0x6   :  { %s507_s19 = smov [#allocation5]  }
   0x7   :  { %s29_s20 = sshll.u32 %s507_s19, 4  ;;  %s30_s20 = int_to_ptr.vmem [resolvable:$true] %s29_s20 }
   0x8   :  { %35 = dma.hbm_to_vmem [thread:$0]  %s28_s16, 32, %s30_s20, [#allocation6], %s505_s17, %s505_s17, %s506_s18  }
   0x9   :  { %498 = dma.done.wait [#allocation3], 80  }
   0xa   :  { %499 = vsyncadd [#allocation3], 4294967216 }
   0xb   :  { %500 = dma.done.wait [#allocation6], 32  }
   0xc   :  { %501 = vsyncadd [#allocation6], 4294967264  ;;  %v543_v0 = vld [vmem:[#allocation2 + $0x4] sm:$0x1]  ;;  %v508_v12 = vmov 683565275  }
   0xd   :  { %v59_v1 = vand.u32 2139095040, %v543_v0  ;;  %v56_v3 = vand.u32 2147483647, %v543_v0  ;;  %v509_v14 = vmov 2475754826   ;;  %vm58_vm12 = vcmp.lt.s32.totalorder %v543_v0, 0 }
   0xe   :  { %v510_v16 = vmov 2131351028   ;;  %v511_v18 = vmov 2102212464   ;;  %v512_v20 = vmov 920167782  }
   0xf   :  { %v60_v2 = vshrl.u32 %v59_v1, 23  ;;  %v63_v6 = vand.u32 8388607, %v56_v3  ;;  %v513_v26 = vmov 1326507024   ;;  %v514_v1 = vmov 0  }
  0x10   :  { %vm57_vm13 = vcmp.le.f32.partialorder %v56_v3, 0.7853982  ;;  %s515_s0 = smov [#allocation7]   ;;  %s393_s23 = sshll.u32 %s598_s2, 4  ;;  %s394_s23 = int_to_ptr.hbm [resolvable:$true] %s393_s23 }
  0x11   :  { %v407_v4 = vadd.s32 4294967169, %v60_v2  ;;  %v64_v9 = vor.u32 8388608, %v63_v6  ;;  %s391_s1 = sshll.u32 %s515_s0, 4  ;;  %s392_s1 = int_to_ptr.vmem [resolvable:$true] %s391_s1 }
  0x13   :  { %v66_v5 = vadd.s32 1, %v407_v4  ;;  %v552_v28 = vshll.u32 %v64_v9, 8 }
  0x15   :  { %vm67_vm0 = vcmp.gt.s32.totalorder %v66_v5, 0  ;;  %v105_v40 = vand.u32 65535, %v552_v28  ;;  %v106_v41 = vshrl.u32 %v552_v28, 16 }
  0x16   :  { %v68_v7 = vsel %vm67_vm0, %v66_v5, 0 }
  0x17   :  { %v70_v8 = vand.u32 31, %v68_v7  ;;  %v549_v10 = vshrl.u32 %v68_v7, 5 }
  0x19   :  { %v71_v11 = vsub.s32 32, %v70_v8  ;;  %v73_v13 = vshll.u32 %v508_v12, %v70_v8  ;;  %v76_v15 = vshll.u32 %v509_v14, %v70_v8  ;;  %v79_v17 = vshll.u32 %v510_v16, %v70_v8 }
  0x1a   :  { %v82_v19 = vshll.u32 %v511_v18, %v70_v8  ;;  %v85_v21 = vshll.u32 %v512_v20, %v70_v8  ;;  %vm88_vm1 = vcmp.lt.s32.totalorder %v549_v10, 1  ;;  %vm91_vm2 = vcmp.lt.s32.totalorder %v549_v10, 4 }
  0x1b   :  { %v74_v22 = vshrl.u32 %v509_v14, %v71_v11  ;;  %v77_v23 = vshrl.u32 %v510_v16, %v71_v11  ;;  %v80_v24 = vshrl.u32 %v511_v18, %v71_v11  ;;  %v83_v25 = vshrl.u32 %v512_v20, %v71_v11 }
  0x1c   :  { %v86_v27 = vshrl.u32 %v513_v26, %v71_v11  ;;  %vm90_vm3 = vcmp.lt.s32.totalorder %v549_v10, 3  ;;  %vm89_vm4 = vcmp.lt.s32.totalorder %v549_v10, 2  ;;  %v72_v48 = vshrl.u32 %v508_v12, %v71_v11 }
  0x1d   :  { %v75_v29 = vor.u32 %v74_v22, %v73_v13  ;;  %v78_v30 = vor.u32 %v77_v23, %v76_v15  ;;  %v81_v31 = vor.u32 %v80_v24, %v79_v17  ;;  %v84_v32 = vor.u32 %v83_v25, %v82_v19 }
  0x1e   :  { %v87_v33 = vor.u32 %v86_v27, %v85_v21 }
  0x1f   :  { %v96_v34 = vsel %vm88_vm1, %v75_v29, %v78_v30  ;;  %v100_v35 = vsel %vm88_vm1, %v78_v30, %v81_v31  ;;  %v97_v36 = vsel %vm91_vm2, %v84_v32, 920167782  ;;  %v92_v61 = vsel %vm88_vm1, %v72_v48, %v75_v29 }
  0x20   :  { %v101_v37 = vsel %vm91_vm2, %v87_v33, 1326507024  ;;  %v98_v38 = vsel %vm90_vm3, %v81_v31, %v97_v36  ;;  %v93_v63 = vsel %vm91_vm2, %v81_v31, 2102212464 }
  0x21   :  { %v102_v39 = vsel %vm90_vm3, %v84_v32, %v101_v37  ;;  %v99_v42 = vsel %vm89_vm4, %v96_v34, %v98_v38  ;;  %v94_v12 = vsel %vm90_vm3, %v78_v30, %v93_v63 }
  0x22   :  { %v103_v43 = vsel %vm89_vm4, %v100_v35, %v102_v39  ;;  %v129_v46 = vand.u32 65535, %v99_v42  ;;  %v130_v47 = vshrl.u32 %v99_v42, 16  ;;  %v95_v20 = vsel %vm89_vm4, %v92_v61, %v94_v12 }
  0x23   :  { %v107_v44 = vand.u32 65535, %v103_v43  ;;  %v108_v45 = vshrl.u32 %v103_v43, 16  ;;  %v149_v24 = vmul.u32 %v552_v28, %v95_v20  ;;  %vm199_vm4 = vweird.f32 %v543_v0 }
  0x24   :  { %v131_v52 = vmul.u32 %v129_v46, %v105_v40  ;;  %v132_v53 = vmul.u32 %v130_v47, %v105_v40  ;;  %v133_v54 = vmul.u32 %v129_v46, %v106_v41  ;;  %v134_v58 = vmul.u32 %v130_v47, %v106_v41 }
  0x25   :  { %v109_v49 = vmul.u32 %v107_v44, %v105_v40  ;;  %v110_v50 = vmul.u32 %v108_v45, %v105_v40  ;;  %v111_v51 = vmul.u32 %v107_v44, %v106_v41  ;;  %v112_v55 = vmul.u32 %v108_v45, %v106_v41 }
  0x26   :  { %v135_v59 = vshll.u32 %v132_v53, 16  ;;  %v137_v60 = vshll.u32 %v133_v54, 16  ;;  %v136_v9 = vshrl.u32 %v132_v53, 16  ;;  %v138_v16 = vshrl.u32 %v133_v54, 16 }
  0x27   :  { %v113_v56 = vshll.u32 %v110_v50, 16  ;;  %v115_v57 = vshll.u32 %v111_v51, 16  ;;  %v114_v5 = vshrl.u32 %v110_v50, 16  ;;  %v116_v13 = vshrl.u32 %v111_v51, 16  ;;  %v55_v50 = vld [vmem:[#allocation5 + $0x1] sm:$0x1] }
  0x28   :  { %vm139_vm6 = vc.u32 %v131_v52, %v135_v59  ;;  %v141_v4 = vadd.s32 %v135_v59, %v131_v52  ;;  %v372_v51 = vmul.f32 0.1, %v55_v50 }
  0x29   :  { %vm117_vm5 = vc.u32 %v109_v49, %v113_v56  ;;  %v119_v62 = vadd.s32 %v113_v56, %v109_v49  ;;  %v140_v7 = vsel %vm139_vm6, 1, %v514_v1 }
  0x2a   :  { %v118_v2 = vsel %vm117_vm5, 1, %v514_v1  ;;  %v142_v11 = vadd.s32 %v140_v7, %v134_v58  ;;  %vm143_vm8 = vc.u32 %v141_v4, %v137_v60  ;;  %v145_v19 = vadd.s32 %v141_v4, %v137_v60 }
  0x2b   :  { %v120_v6 = vadd.s32 %v118_v2, %v112_v55  ;;  %vm121_vm7 = vc.u32 %v119_v62, %v115_v57  ;;  %v144_v15 = vsel %vm143_vm8, 1, %v514_v1  ;;  %v373_v55 = vsub.f32 %v543_v0, %v372_v51 }
  0x2c   :  { %v122_v8 = vsel %vm121_vm7, 1, %v514_v1  ;;  %v146_v17 = vadd.s32 %v144_v15, %v142_v11 }
  0x2d   :  { %v124_v14 = vadd.s32 %v122_v8, %v120_v6  ;;  %386 = vst [vmem:[#allocation7 + $0x4] sm:$0x1] %v373_v55 }
  0x2e   :  { %v147_v21 = vadd.s32 %v146_v17, %v136_v9 }
  0x2f   :  { %v125_v18 = vadd.s32 %v124_v14, %v114_v5 }
  0x30   :  { %v148_v23 = vadd.s32 %v147_v21, %v138_v16  ;;  %v53_v16 = vld [vmem:[#allocation5] sm:$0x1] }
  0x31   :  { %v126_v22 = vadd.s32 %v125_v18, %v116_v13 }
  0x32   :  { %v152_v25 = vadd.s32 1, %v148_v23 }
  0x33   :  { %vm151_vm9 = vc.u32 %v126_v22, %v145_v19  ;;  %v150_v10 = vadd.s32 %v145_v19, %v126_v22 }
  0x34   :  { %v153_v26 = vsel %vm151_vm9, %v152_v25, %v148_v23  ;;  %v46_v25 = vld [vmem:[#allocation2 + $0x1] sm:$0x1] }
  0x35   :  { %v154_v27 = vadd.s32 %v153_v26, %v149_v24  ;;  %v50_v26 = vld [vmem:[#allocation2 + $0x3] sm:$0x1] }
  0x37   :  { %v155_v29 = vadd.s32 536870912, %v154_v27 }
  0x39   :  { %v156_v30 = vshrl.u32 %v155_v29, 30 }
  0x3b   :  { %v157_v31 = vshll.u32 %v156_v30, 30  ;;  %v180_v48 = vsub.s32 4, %v156_v30 }
  0x3d   :  { %v158_v32 = vsub.s32 %v154_v27, %v157_v31  ;;  %v181_v53 = vsel %vm58_vm12, %v180_v48, %v156_v30 }
  0x3e   :  { %v183_v57 = vsel %vm57_vm13, 0, %v181_v53 }
  0x3f   :  { %vm159_vm10 = vcmp.lt.s32.totalorder %v158_v32, 0  ;;  %v160_v33 = vsub.s32 0, %v158_v32  ;;  %v354_v62 = vadd.s32 3, %v183_v57  ;;  %v200_v4 = vand.u32 3, %v183_v57 }
  0x41   :  { %v161_v34 = vsel %vm159_vm10, %v160_v33, %v158_v32  ;;  %v355_v5 = vand.u32 3, %v354_v62  ;;  %vm205_vm14 = vcmp.eq.s32.totalorder %v200_v4, 2  ;;  %vm201_vm0 = vcmp.lt.s32.totalorder %v200_v4, 2 }
  0x42   :  { %v162_v35 = vclz %v161_v34  ;;  %vm202_vm1 = vcmp.eq.s32.totalorder %v200_v4, 0 }
  0x43   :  { %vm360_vm15 = vcmp.eq.s32.totalorder %v355_v5, 2  ;;  %vm357_vm2 = vcmp.eq.s32.totalorder %v355_v5, 0  ;;  %vm356_vm3 = vcmp.lt.s32.totalorder %v355_v5, 2 }
  0x44   :  { %v408_v36 = vadd.s32 4294967294, %v162_v35 }
  0x46   :  { %vm409_vm11 = vcmp.lt.s32.totalorder %v408_v36, 0 }
  0x47   :  { %v165_v37 = vsel %vm409_vm11, 0, %v408_v36 }
  0x48   :  { %v166_v38 = vsub.s32 32, %v165_v37  ;;  %v167_v39 = vshll.u32 %v158_v32, %v165_v37  ;;  %v170_v40 = vsub.s32 4294967266, %v165_v37  ;;  %v48_v32 = vld [vmem:[#allocation2 + $0x2] sm:$0x1] }
  0x4a   :  { %v168_v28 = vshrl.u32 %v150_v10, %v166_v38  ;;  %v171_v41 = vadd.s32 127, %v170_v40 }
  0x4c   :  { %v169_v42 = vor.u32 %v168_v28, %v167_v39  ;;  %v172_v43 = vshll.u32 %v171_v41, 23 }
  0x4e   :  { %v173_v44 = vor.u32 4788187, %v172_v43  ;;  %v176_v45 = vcvt.s32.f32 %v169_v42 }
  0x50   :  { %v174_v46 = vand.u32 2147483647, %v173_v44 }
  0x52   :  { %v177_v47 = vmul.f32 %v176_v45, %v174_v46 }
  0x54   :  { %v178_v49 = vxor.u32 2147483648, %v177_v47 }
  0x56   :  { %v179_v52 = vsel %vm58_vm12, %v178_v49, %v177_v47 }
  0x57   :  { %v182_v54 = vsel %vm57_vm13, %v543_v0, %v179_v52  ;;  %v44_v0 = vld [vmem:[#allocation2] sm:$0x1] }
  0x58   :  { %v184_v56 = vmul.f32 %v182_v54, %v182_v54 }
  0x5a   :  { %v185_v58 = vmul.f32 -0.001358992, %v184_v56  ;;  %v192_v59 = vmul.f32 -0.00019511016, %v184_v56 }
  0x5c   :  { %v186_v60 = vadd.f32 0.041655596, %v185_v58  ;;  %v193_v61 = vadd.f32 0.008332121, %v192_v59 }
  0x5e   :  { %v187_v63 = vmul.f32 %v186_v60, %v184_v56  ;;  %v194_v1 = vmul.f32 %v193_v61, %v184_v56 }
  0x60   :  { %v188_v3 = vadd.f32 -0.4999988, %v187_v63  ;;  %v195_v2 = vadd.f32 -0.16666654, %v194_v1 }
  0x62   :  { %v189_v6 = vmul.f32 %v188_v3, %v184_v56  ;;  %v196_v7 = vmul.f32 %v195_v2, %v184_v56 }
  0x64   :  { %v190_v8 = vadd.f32 1.0, %v189_v6  ;;  %v197_v9 = vadd.f32 1.0, %v196_v7 }
  0x66   :  { %v198_v11 = vmul.f32 %v197_v9, %v182_v54  ;;  %v206_v12 = vxor.u32 2147483648, %v190_v8 }
  0x68   :  { %v203_v13 = vxor.u32 2147483648, %v198_v11  ;;  %v207_v14 = vsel %vm205_vm14, %v206_v12, %v198_v11  ;;  %v362_v15 = vsel %vm360_vm15, %v206_v12, %v198_v11 }
  0x6a   :  { %v204_v17 = vsel %vm202_vm1, %v190_v8, %v203_v13  ;;  %v359_v18 = vsel %vm357_vm2, %v190_v8, %v203_v13 }
  0x6b   :  { %v208_v19 = vsel %vm201_vm0, %v204_v17, %v207_v14  ;;  %v363_v20 = vsel %vm356_vm3, %v359_v18, %v362_v15 }
  0x6c   :  { %v209_v21 = vsel %vm199_vm4, nan, %v208_v19  ;;  %v364_v22 = vsel %vm199_vm4, nan, %v363_v20 }
  0x6d   :  { %v365_v23 = vmul.f32 %v209_v21, %v53_v16  ;;  %v369_v24 = vmul.f32 %v364_v22, %v53_v16 }
  0x6f   :  { %v366_v27 = vmul.f32 0.018, %v365_v23  ;;  %v370_v29 = vmul.f32 0.018, %v369_v24 }
  0x71   :  { %v367_v30 = vadd.f32 %v366_v27, %v46_v25  ;;  %v371_v31 = vsub.f32 %v50_v26, %v370_v29 }
  0x73   :  { %v413_v33 = vadd.f32 -0.012, %v367_v30  ;;  %v379_v34 = vmul.f32 0.1, %v371_v31  ;;  %384 = vst [vmem:[#allocation7 + $0x3] sm:$0x1] %v371_v31 }
  0x75   :  { %v374_v35 = vmul.f32 0.1, %v413_v33  ;;  %378 = vst [vmem:[#allocation7 + $0x1] sm:$0x1] %v413_v33  ;;  %v380_v36 = vadd.f32 %v379_v34, %v48_v32 }
  0x77   :  { %v375_v10 = vadd.f32 %v374_v35, %v44_v0  ;;  %382 = vst [vmem:[#allocation7 + $0x2] sm:$0x1] %v380_v36 }
  0x79   :  { %376 = vst [vmem:[#allocation7] sm:$0x1] %v375_v10 }
  0x7a   :  { %399 = dma.vmem_to_hbm [thread:$0]  %s392_s1, 80, %s394_s23, [#allocation4], %s505_s17, %s505_s17, %s506_s18  }
  0x7b   :  { %502 = dma.done.wait [#allocation4], 80  }
  0x7c   :  { %503 = vsyncadd [#allocation4], 4294967216 }
  0x7d   :  { %404 = vsyncpa [#allocation3], 1 }
  0x7e   :  { %405 = vsyncpa [#allocation6], 1 }
  0x7f   :  { %406 = vsyncpa [#allocation4], 1 }

</bundles_post_ra>
